<compile_context>
chip_gen: v7x
topology: tpu7x:2x2x1
jax: 0.10.0
libtpu: 0.0.40
codegen_flags: <defaults>
</compile_context>

<pallas_src>
import jax
import jax.numpy as jnp
from jax.experimental import pallas as pl
from jax.experimental.pallas import tpu as pltpu

H = 128  # padded lane width used for every hidden / output dimension


def _round_up(n, m):
    return (n + m - 1) // m * m


def qnetwork_kernel(x_ref, w1_ref, w_ref, b_ref, o_ref):
    """Fused 4-layer MLP forward on one batch tile.

    x_ref : (TILE_B, S)    f32 input tile (streamed)
    w1_ref: (S, 128)       bf16 fc1 weight, cols >= 64 zero-padded          (VMEM-resident)
    w_ref : (3, 128, 128)  bf16 stacked [fc2, fc3, fc4] weights, zero-padded(VMEM-resident)
    b_ref : (4, 128)       f32 stacked zero-padded biases                   (VMEM-resident)
    o_ref : (TILE_B, 128)  f32 lane-dense padded output tile
    """
    b = b_ref[...]  # (4, 128) f32

    # fc1 + ReLU  (bf16 MXU matmul, f32 accumulate / elementwise)
    h = jnp.dot(x_ref[...].astype(jnp.bfloat16), w1_ref[...],
                preferred_element_type=jnp.float32) + b[0:1, :]
    h = jnp.maximum(h, 0.0)

    # fc2, fc3 (+ReLU), fc4 (no ReLU) — static unroll, all (128,128) padded weights
    for layer in range(3):
        h = jnp.dot(h.astype(jnp.bfloat16), w_ref[layer],
                    preferred_element_type=jnp.float32) + b[layer + 1:layer + 2, :]
        if layer < 2:
            h = jnp.maximum(h, 0.0)

    o_ref[...] = h.astype(o_ref.dtype)


def _pad2(a, rows, cols):
    return jnp.pad(a, ((0, rows - a.shape[0]), (0, cols - a.shape[1])))


def pack_params(params):
    """Pad weights/biases to 128-wide lanes, cast weights to bf16, stack to 4 arrays."""
    state_size = params["w1"].shape[0]
    w1p = _pad2(params["w1"], state_size, H).astype(jnp.bfloat16)          # (S, 128)
    w2p = _pad2(params["w2"], H, H).astype(jnp.bfloat16)                   # (128, 128)
    w3p = _pad2(params["w3"], H, H).astype(jnp.bfloat16)
    w4p = _pad2(params["w4"], H, H).astype(jnp.bfloat16)
    w_stack = jnp.stack([w2p, w3p, w4p], axis=0)                           # (3, 128, 128)
    b_packed = jnp.stack(
        [jnp.pad(params[f"b{i}"], (0, H - params[f"b{i}"].shape[0])).astype(jnp.float32)
         for i in (1, 2, 3, 4)], axis=0)                                   # (4, 128)
    return w1p, w_stack, b_packed


def qnetwork_forward(x, params, *, tile_b=2048):
    """x: (B, state_size) float32. Returns (B, action_size) float32."""
    B, S = x.shape
    action_size = params["w4"].shape[1]
    w1p, w_stack, b_packed = pack_params(params)

    # Batch tiling: tile second-to-last dim must be a multiple of 8; pad tail tile with zeros.
    tile = min(tile_b, _round_up(max(B, 8), 8))
    b_pad = _round_up(B, tile)
    if b_pad != B:
        x = jnp.pad(x, ((0, b_pad - B), (0, 0)))
    grid = (b_pad // tile,)

    out = pl.pallas_call(
        qnetwork_kernel,
        out_shape=jax.ShapeDtypeStruct((b_pad, H), jnp.float32),
        grid=grid,
        in_specs=[
            pl.BlockSpec((tile, S), lambda i: (i, 0)),        # x: streamed per batch tile
            pl.BlockSpec((S, H), lambda i: (0, 0)),           # w1: fetched once, VMEM-resident
            pl.BlockSpec((3, H, H), lambda i: (0, 0, 0)),     # w2/w3/w4 stack: VMEM-resident
            pl.BlockSpec((4, H), lambda i: (0, 0)),           # packed biases: VMEM-resident
        ],
        out_specs=pl.BlockSpec((tile, H), lambda i: (i, 0)),  # lane-dense padded output
        compiler_params=pltpu.CompilerParams(
            dimension_semantics=("parallel",)),               # megacore-shard batch on v7x
    )(x, w1p, w_stack, b_packed)

    return out[:B, :action_size]


def init_params(key, state_size, action_size):
    """PyTorch-style nn.Linear init: U(-1/sqrt(fan_in), 1/sqrt(fan_in)).
    Weights stored as (in_features, out_features); biases as (out_features,)."""
    dims = [(state_size, 64), (64, 128), (128, 64), (64, action_size)]
    params = {}
    for i, (fan_in, fan_out) in enumerate(dims, start=1):
        key, kw, kb = jax.random.split(key, 3)
        bound = 1.0 / jnp.sqrt(jnp.float32(fan_in))
        params[f"w{i}"] = jax.random.uniform(
            kw, (fan_in, fan_out), jnp.float32, minval=-bound, maxval=bound)
        params[f"b{i}"] = jax.random.uniform(
            kb, (fan_out,), jnp.float32, minval=-bound, maxval=bound)
    return params


def reference_forward(x, params):
    """Same math as the kernel (bf16 matmul inputs, f32 accumulation/elementwise)."""
    def lin(h, w, b):
        return jnp.dot(h.astype(jnp.bfloat16), w.astype(jnp.bfloat16),
                       preferred_element_type=jnp.float32) + b
    h = jnp.maximum(lin(x, params["w1"], params["b1"]), 0.0)
    h = jnp.maximum(lin(h, params["w2"], params["b2"]), 0.0)
    h = jnp.maximum(lin(h, params["w3"], params["b3"]), 0.0)
    return lin(h, params["w4"], params["b4"])


if __name__ == "__main__":
    state_size = 8    # LunarLander-v2 observation dim
    action_size = 4   # LunarLander-v2 action dim
    batch = 2

    key = jax.random.PRNGKey(0)
    key, kx = jax.random.split(key)
    x = jax.random.normal(kx, (batch, state_size), dtype=jnp.float32)
    params = init_params(key, state_size, action_size)

    # Tiny-batch path (single padded tile).
    out = jax.block_until_ready(qnetwork_forward(x, params))
    ref = reference_forward(x, params)
    assert out.shape == (batch, action_size)
    assert jnp.allclose(out, ref, atol=1e-3, rtol=1e-3), "mismatch vs reference (B=2)"

    # Exercise the batch grid + tail-padding path (3 tiles of 128 for B=300).
    key, kx2 = jax.random.split(key)
    x2 = jax.random.normal(kx2, (300, state_size), dtype=jnp.float32)
    out2 = jax.block_until_ready(qnetwork_forward(x2, params, tile_b=128))
    ref2 = reference_forward(x2, params)
    assert out2.shape == (300, action_size)
    assert jnp.allclose(out2, ref2, atol=1e-3, rtol=1e-3), "mismatch vs reference (B=300)"

    print("KERNEL_OK")
</pallas_src>

<mosaic_0001>
module attributes {stable_mosaic.version = 11 : i64} {
  func.func @qnetwork_kernel(%arg0: i32, %arg1: memref<8x8xf32, #tpu.memory_space<vmem>>, %arg2: memref<8x128xbf16, #tpu.memory_space<vmem>>, %arg3: memref<3x128x128xbf16, #tpu.memory_space<vmem>>, %arg4: memref<4x128xf32, #tpu.memory_space<vmem>>, %arg5: memref<8x128xf32, #tpu.memory_space<vmem>>) attributes {dimension_semantics = [#tpu.dimension_semantics<parallel>], iteration_bounds = array<i64: 1>, scalar_prefetch = 0 : i64, scratch_operands = 0 : i64, tpu.core_type = #tpu.core_type<tc>, window_params = [{transform_indices = @transform_0, window_bounds = array<i64: 8, 8>}, {pipeline_mode = #tpu.pipeline_mode<synchronous>, transform_indices = @transform_1, window_bounds = array<i64: 8, 128>}, {pipeline_mode = #tpu.pipeline_mode<synchronous>, transform_indices = @transform_2, window_bounds = array<i64: 3, 128, 128>}, {pipeline_mode = #tpu.pipeline_mode<synchronous>, transform_indices = @transform_3, window_bounds = array<i64: 4, 128>}, {transform_indices = @transform_4, window_bounds = array<i64: 8, 128>}]} {
    %c0 = arith.constant 0 : index
    %c0_0 = arith.constant 0 : index
    %0 = vector.load %arg4[%c0, %c0_0] : memref<4x128xf32, #tpu.memory_space<vmem>>, vector<4x128xf32>
    %c0_1 = arith.constant 0 : index
    %c0_2 = arith.constant 0 : index
    %1 = vector.load %arg1[%c0_1, %c0_2] : memref<8x8xf32, #tpu.memory_space<vmem>>, vector<8x8xf32>
    %2 = arith.truncf %1 : vector<8x8xf32> to vector<8x8xbf16>
    %c0_3 = arith.constant 0 : index
    %c0_4 = arith.constant 0 : index
    %3 = vector.load %arg2[%c0_3, %c0_4] : memref<8x128xbf16, #tpu.memory_space<vmem>>, vector<8x128xbf16>
    %cst = arith.constant dense<0.000000e+00> : vector<8x128xf32>
    %4 = tpu.matmul %2, %3, %cst {dimension_numbers = #tpu.dot_dimension_numbers<[1], [0], [0], [1], [0, 0, 1, 1], [], []>} : vector<8x8xbf16>, vector<8x128xbf16>, vector<8x128xf32> -> vector<8x128xf32>
    %5 = vector.extract_strided_slice %0 {offsets = [0, 0], sizes = [1, 128], strides = [1, 1]} : vector<4x128xf32> to vector<1x128xf32>
    %6 = vector.broadcast %5 : vector<1x128xf32> to vector<8x128xf32>
    %7 = arith.addf %4, %6 : vector<8x128xf32>
    %cst_5 = arith.constant 0.000000e+00 : f32
    %8 = vector.broadcast %cst_5 : f32 to vector<8x128xf32>
    %9 = arith.maximumf %7, %8 : vector<8x128xf32>
    %10 = arith.truncf %9 : vector<8x128xf32> to vector<8x128xbf16>
    %c0_6 = arith.constant 0 : index
    %c0_7 = arith.constant 0 : index
    %c0_8 = arith.constant 0 : index
    %11 = vector.load %arg3[%c0_6, %c0_7, %c0_8] : memref<3x128x128xbf16, #tpu.memory_space<vmem>>, vector<1x128x128xbf16>
    %12 = vector.shape_cast %11 : vector<1x128x128xbf16> to vector<128x128xbf16>
    %cst_9 = arith.constant dense<0.000000e+00> : vector<8x128xf32>
    %13 = tpu.matmul %10, %12, %cst_9 {dimension_numbers = #tpu.dot_dimension_numbers<[1], [0], [0], [1], [0, 0, 1, 1], [], []>} : vector<8x128xbf16>, vector<128x128xbf16>, vector<8x128xf32> -> vector<8x128xf32>
    %14 = vector.extract_strided_slice %0 {offsets = [1, 0], sizes = [1, 128], strides = [1, 1]} : vector<4x128xf32> to vector<1x128xf32>
    %15 = vector.broadcast %14 : vector<1x128xf32> to vector<8x128xf32>
    %16 = arith.addf %13, %15 : vector<8x128xf32>
    %cst_10 = arith.constant 0.000000e+00 : f32
    %17 = vector.broadcast %cst_10 : f32 to vector<8x128xf32>
    %18 = arith.maximumf %16, %17 : vector<8x128xf32>
    %19 = arith.truncf %18 : vector<8x128xf32> to vector<8x128xbf16>
    %c1 = arith.constant 1 : index
    %c0_11 = arith.constant 0 : index
    %c0_12 = arith.constant 0 : index
    %20 = vector.load %arg3[%c1, %c0_11, %c0_12] : memref<3x128x128xbf16, #tpu.memory_space<vmem>>, vector<1x128x128xbf16>
    %21 = vector.shape_cast %20 : vector<1x128x128xbf16> to vector<128x128xbf16>
    %cst_13 = arith.constant dense<0.000000e+00> : vector<8x128xf32>
    %22 = tpu.matmul %19, %21, %cst_13 {dimension_numbers = #tpu.dot_dimension_numbers<[1], [0], [0], [1], [0, 0, 1, 1], [], []>} : vector<8x128xbf16>, vector<128x128xbf16>, vector<8x128xf32> -> vector<8x128xf32>
    %23 = vector.extract_strided_slice %0 {offsets = [2, 0], sizes = [1, 128], strides = [1, 1]} : vector<4x128xf32> to vector<1x128xf32>
    %24 = vector.broadcast %23 : vector<1x128xf32> to vector<8x128xf32>
    %25 = arith.addf %22, %24 : vector<8x128xf32>
    %cst_14 = arith.constant 0.000000e+00 : f32
    %26 = vector.broadcast %cst_14 : f32 to vector<8x128xf32>
    %27 = arith.maximumf %25, %26 : vector<8x128xf32>
    %28 = arith.truncf %27 : vector<8x128xf32> to vector<8x128xbf16>
    %c2 = arith.constant 2 : index
    %c0_15 = arith.constant 0 : index
    %c0_16 = arith.constant 0 : index
    %29 = vector.load %arg3[%c2, %c0_15, %c0_16] : memref<3x128x128xbf16, #tpu.memory_space<vmem>>, vector<1x128x128xbf16>
    %30 = vector.shape_cast %29 : vector<1x128x128xbf16> to vector<128x128xbf16>
    %cst_17 = arith.constant dense<0.000000e+00> : vector<8x128xf32>
    %31 = tpu.matmul %28, %30, %cst_17 {dimension_numbers = #tpu.dot_dimension_numbers<[1], [0], [0], [1], [0, 0, 1, 1], [], []>} : vector<8x128xbf16>, vector<128x128xbf16>, vector<8x128xf32> -> vector<8x128xf32>
    %32 = vector.extract_strided_slice %0 {offsets = [3, 0], sizes = [1, 128], strides = [1, 1]} : vector<4x128xf32> to vector<1x128xf32>
    %33 = vector.broadcast %32 : vector<1x128xf32> to vector<8x128xf32>
    %34 = arith.addf %31, %33 : vector<8x128xf32>
    %c0_18 = arith.constant 0 : index
    %c0_19 = arith.constant 0 : index
    %35 = vector.load %arg5[%c0_18, %c0_19] : memref<8x128xf32, #tpu.memory_space<vmem>>, vector<8x128xf32>
    tpu.vector_store %arg5[%c0_18, %c0_19], %34 {strides = array<i32>} : memref<8x128xf32, #tpu.memory_space<vmem>>, vector<8x128xf32>,
    return
  }
  func.func @transform_0(%arg0: i32) -> (i32, i32) {
    %c0_i32 = arith.constant 0 : i32
    %c0_i32_0 = arith.constant 0 : i32
    return %arg0, %c0_i32 : i32, i32
  }
  func.func @transform_1(%arg0: i32) -> (i32, i32) {
    %c0_i32 = arith.constant 0 : i32
    %c0_i32_0 = arith.constant 0 : i32
    %c0_i32_1 = arith.constant 0 : i32
    return %c0_i32, %c0_i32_0 : i32, i32
  }
  func.func @transform_2(%arg0: i32) -> (i32, i32, i32) {
    %c0_i32 = arith.constant 0 : i32
    %c0_i32_0 = arith.constant 0 : i32
    %c0_i32_1 = arith.constant 0 : i32
    %c0_i32_2 = arith.constant 0 : i32
    return %c0_i32, %c0_i32_0, %c0_i32_1 : i32, i32, i32
  }
  func.func @transform_3(%arg0: i32) -> (i32, i32) {
    %c0_i32 = arith.constant 0 : i32
    %c0_i32_0 = arith.constant 0 : i32
    %c0_i32_1 = arith.constant 0 : i32
    return %c0_i32, %c0_i32_0 : i32, i32
  }
  func.func @transform_4(%arg0: i32) -> (i32, i32) {
    %c0_i32 = arith.constant 0 : i32
    %c0_i32_0 = arith.constant 0 : i32
    return %arg0, %c0_i32 : i32, i32
  }
}

</mosaic_0001>

<bundles_post_ra>
// kernel: tpu_custom_call.1
= control target key start
LH: loop header
LB: loop body
LE: loop exit
PB: predicated region body
PF: predicated region fallthrough
CT: control target
= control target key end

     0   :  { %9 = vsyncpa [#allocation3], 0  ;;  %s830_s0 = inlined_call_operand.hbm [shape: f32[8,8], index: 0, kind: input, shape index: {}]   ;;  %s831_s1 = inlined_call_operand.hbm [shape: bf16[8,128], index: 1, kind: input, shape index: {}]   ;;  %s832_s2 = inlined_call_operand.hbm [shape: bf16[3,128,128], index: 2, kind: input, shape index: {}]   ;;  %s833_s3 = inlined_call_operand.vmem [shape: f32[4,128], index: 3, kind: input, shape index: {}]   ;;  %s834_s4 = inlined_call_operand.hbm [shape: f32[8,128], index: 4, kind: output, shape index: {}]  }
   0x1   :  { %10 = vsyncpa [#allocation6], 0 }
   0x2   :  { %11 = vsyncpa [#allocation4], 0  ;;  %s707_s15 = smov [#allocation5]   ;;  %s708_s17 = smov [#allocation2]  }
   0x3   :  { %s28_s16 = sshll.u32 %s707_s15, 4  ;;  %s18_s18 = sshll.u32 %s708_s17, 4  ;;  %s29_s16 = int_to_ptr.vmem [resolvable:$true] %s28_s16  ;;  %s19_s18 = int_to_ptr.vmem [resolvable:$true] %s18_s18 }
   0x4   :  { %s613_s21 = scalar_lea.hbm %s831_s1, 64 }
   0x5   :  { %p614_p0 = scmp.ne.s32.totalorder %s831_s1, %s613_s21  ;;  %p617_p1 = scmp.lt.u32.totalorder %s613_s21, %s831_s1 }
   0x7   :  { %p619_p2 = pnand %p617_p1, %p614_p0 }
   0x9   :  { %622 = shalt.err (!%p619_p2)
}
   0xa   :  { %s623_s26 = scalar_lea.vmem %s29_s16, 64  ;;  %p628_p4 = scmp.lt.s32.totalorder %s29_s16, %s29_s16 }
   0xb   :  { %p624_p3 = scmp.ne.s32.totalorder %s29_s16, %s623_s26  ;;  %p629_p5 = scmp.lt.s32.totalorder %s623_s26, %s623_s26 }
   0xd   :  { %p630_p6 = por %p629_p5, %p628_p4 }
   0xf   :  { %p631_p7 = pnand %p630_p6, %p624_p3 }
  0x11   :  { %634 = shalt.err (!%p631_p7)
}
  0x12   :  { %31 = dma.hbm_to_vmem [thread:$0]  %s831_s1, 64, %s29_s16, [#allocation6]  }
  0x13   :  { %s635_s5 = scalar_lea.hbm %s830_s0, 128 }
  0x14   :  { %p636_p8 = scmp.ne.s32.totalorder %s830_s0, %s635_s5  ;;  %p639_p9 = scmp.lt.u32.totalorder %s635_s5, %s830_s0 }
  0x16   :  { %p641_p10 = pnand %p639_p9, %p636_p8 }
  0x18   :  { %644 = shalt.err (!%p641_p10)
}
  0x19   :  { %s645_s10 = scalar_lea.vmem %s19_s18, 128  ;;  %p650_p12 = scmp.lt.s32.totalorder %s19_s18, %s19_s18 }
  0x1a   :  { %p646_p11 = scmp.ne.s32.totalorder %s19_s18, %s645_s10  ;;  %p651_p13 = scmp.lt.s32.totalorder %s645_s10, %s645_s10 }
  0x1c   :  { %p652_p0 = por %p651_p13, %p650_p12 }
  0x1e   :  { %p653_p1 = pnand %p652_p0, %p646_p11 }
  0x20   :  { %656 = shalt.err (!%p653_p1)
}
  0x21   :  { %21 = dma.hbm_to_vmem [thread:$0]  %s830_s0, 128, %s19_s18, [#allocation3]  }
  0x22   :  { %s709_s12 = smov [#allocation7]   ;;  %s657_s16 = scalar_lea.hbm %s832_s2, 3072 }
  0x23   :  { %s37_s13 = sshll.u32 %s709_s12, 4  ;;  %p658_p2 = scmp.ne.s32.totalorder %s832_s2, %s657_s16  ;;  %s38_s13 = int_to_ptr.vmem [resolvable:$true] %s37_s13 }
  0x24   :  { %p661_p3 = scmp.lt.u32.totalorder %s657_s16, %s832_s2 }
  0x26   :  { %p663_p4 = pnand %p661_p3, %p658_p2 }
  0x28   :  { %666 = shalt.err (!%p663_p4)
}
  0x29   :  { %s667_s22 = scalar_lea.vmem %s38_s13, 3072  ;;  %p672_p6 = scmp.lt.s32.totalorder %s38_s13, %s38_s13 }
  0x2a   :  { %p668_p5 = scmp.ne.s32.totalorder %s38_s13, %s667_s22  ;;  %p673_p7 = scmp.lt.s32.totalorder %s667_s22, %s667_s22 }
  0x2c   :  { %p674_p8 = por %p673_p7, %p672_p6 }
  0x2e   :  { %p675_p9 = pnand %p674_p8, %p668_p5 }
  0x30   :  { %678 = shalt.err (!%p675_p9)
}
  0x31   :  { %s710_s0 = smov 64   ;;  %s711_s18 = smov 4  }
  0x32   :  { %43 = dma.hbm_to_vmem [thread:$0]  %s832_s2, 3072, %s38_s13, [#allocation6], %s710_s0, %s710_s0, %s711_s18  }
  0x33   :  { %701 = dma.done.wait [#allocation3], 128  }
  0x34   :  { %702 = vsyncadd [#allocation3], 4294967168 }
  0x35   :  { %703 = dma.done.wait [#allocation6], 3136  }
  0x36   :  { %704 = vsyncadd [#allocation6], 4294964160  ;;  %v712_v0 = vmov 0.0   ;;  %vm713_vm0 = vmmov 0   ;;  %vm68_vm1 = vcmask 1043456   ;;  %v57_v2 = vld [vmem:[#allocation2] sm:$0xff]  ;;  %v60_v19 = vlaneseq }
  0x37   :  { %515 = vmatprep.subr.bf16.mxu0 %v712_v0  ;;  %517 = vmatprep.mubr.msk.bf16.mxu0 %vm713_vm0, %v712_v0  ;;  %v59_v1 = vld [vmem:[#allocation5] sm:$0xf]  ;;  %v58_v4 = vpack.c.bf16 %v57_v2, %v57_v2  ;;  %v589_v5 = vld [vmem:[#allocation7] sm:$0xff]   ;;  %vm64_vm2 = vcmask 64512   ;;  %v590_v6 = vld [vmem:[#allocation7 + $0x8] sm:$0xff]  }
  0x38   :  { %521 = vmatprep.subr.bf16.mxu1 %v712_v0  ;;  %537 = vmatprep.mubr.msk.bf16.mxu1 %vm713_vm0, %v712_v0  ;;  %v70_v3 = vsel %vm68_vm1, %v59_v1, 0  ;;  %v591_v7 = vld [vmem:[#allocation7 + $0x10] sm:$0xff]   ;;  %v592_v8 = vld [vmem:[#allocation7 + $0x18] sm:$0xff]   ;;  %v593_v9 = vld [vmem:[#allocation7 + $0x20] sm:$0xff]   ;;  %v799_v20 = vshrl.u32 %v60_v19, 7 }
  0x39   :  { %516 = vmatpush3.bf16.msra.mxu0 %v70_v3  ;;  %522 = vmatpush3.bf16.msra.mxu1 %v589_v5  ;;  %v594_v10 = vld [vmem:[#allocation7 + $0x28] sm:$0xff]   ;;  %v595_v11 = vld [vmem:[#allocation7 + $0x30] sm:$0xff]   ;;  %v596_v12 = vld [vmem:[#allocation7 + $0x38] sm:$0xff]  }
  0x3a   :  { %541 = vmatprep.subr.bf16.mxu0 %v712_v0  ;;  %523 = vmatprep.subr.bf16.mxu1 %v712_v0  ;;  %v597_v13 = vld [vmem:[#allocation7 + $0x40] sm:$0xff]   ;;  %v598_v14 = vld [vmem:[#allocation7 + $0x48] sm:$0xff]   ;;  %v599_v15 = vld [vmem:[#allocation7 + $0x50] sm:$0xff]   ;;  %v62_v21 = vsub.s32 0, %v799_v20  ;;  %v132_v39 = vsub.s32 1, %v799_v20  ;;  %v243_v50 = vsub.s32 2, %v799_v20 }
  0x3b   :  { %v600_v16 = vld [vmem:[#allocation7 + $0x58] sm:$0xff]   ;;  %v601_v17 = vld [vmem:[#allocation7 + $0x60] sm:$0xff]   ;;  %v602_v18 = vld [vmem:[#allocation7 + $0x68] sm:$0xff]   ;;  %v354_v59 = vsub.s32 3, %v799_v20 }
  0x3c   :  { %518 = vmatmul.mubr.msk.bf16.vlgmr.msra.gmra.mrb[0].mxu0 %vm64_vm2, %v58_v4  ;;  %v56_v22 = vld [vmem:[%s833_s3] sm:$0xf]  ;;  %v604_v32 = vld [vmem:[#allocation7 + $0x78] sm:$0xff]   ;;  %v605_v33 = vld [vmem:[#allocation7 + $0x80] sm:$0xff]   ;;  %s714_s3 = smov [#allocation8]  }
  0x3d   :  { %557 = vmatprep.mubr.msk.bf16.mxu0 %vm713_vm0, %v712_v0  ;;  %524 = vmatpush3.bf16.msra.mxu1 %v590_v6  ;;  %v63_v23 = vrot.slane %v56_v22, %v62_v21  ;;  %v603_v31 = vld [vmem:[#allocation7 + $0x70] sm:$0xff]   ;;  %v606_v34 = vld [vmem:[#allocation7 + $0x88] sm:$0xff]   ;;  %v608_v36 = vld [vmem:[#allocation7 + $0x98] sm:$0xff]   ;;  %v133_v40 = vrot.slane %v56_v22, %v132_v39  ;;  %v244_v51 = vrot.slane %v56_v22, %v243_v50  ;;  %s451_s26 = sshll.u32 %s714_s3, 4  ;;  %s452_s26 = int_to_ptr.vmem [resolvable:$true] %s451_s26 }
  0x3e   :  { %525 = vmatprep.subr.bf16.mxu1 %v712_v0  ;;  %542 = vmatpush3.bf16.msra.mxu0 %v597_v13  ;;  %v607_v35 = vld [vmem:[#allocation7 + $0x90] sm:$0xff]   ;;  %v609_v37 = vld [vmem:[#allocation7 + $0xa0] sm:$0xff]   ;;  %v610_v38 = vld [vmem:[#allocation7 + $0xa8] sm:$0xff]   ;;  %v355_v60 = vrot.slane %v56_v22, %v354_v59  ;;  %s679_s27 = scalar_lea.vmem %s452_s26, 128  ;;  %p684_p11 = scmp.lt.s32.totalorder %s452_s26, %s452_s26 }
  0x3f   :  { %543 = vmatprep.subr.bf16.mxu0 %v712_v0  ;;  %v611_v48 = vld [vmem:[#allocation7 + $0xb0] sm:$0xff]   ;;  %v612_v49 = vld [vmem:[#allocation7 + $0xb8] sm:$0xff]   ;;  %p680_p10 = scmp.ne.s32.totalorder %s452_s26, %s679_s27  ;;  %p685_p12 = scmp.lt.s32.totalorder %s679_s27, %s679_s27 }
  0x41   :  { %526 = vmatpush3.bf16.msra.mxu1 %v591_v7  ;;  %p686_p13 = por %p685_p12, %p684_p11 }
  0x42   :  { %527 = vmatprep.subr.bf16.mxu1 %v712_v0  ;;  %544 = vmatpush3.bf16.msra.mxu0 %v598_v14 }
  0x43   :  { %545 = vmatprep.subr.bf16.mxu0 %v712_v0  ;;  %p687_p0 = pnand %p686_p13, %p680_p10 }
  0x45   :  { %528 = vmatpush3.bf16.msra.mxu1 %v592_v8 }
  0x46   :  { %529 = vmatprep.subr.bf16.mxu1 %v712_v0  ;;  %546 = vmatpush3.bf16.msra.mxu0 %v599_v15 }
  0x47   :  { %547 = vmatprep.subr.bf16.mxu0 %v712_v0 }
  0x49   :  { %530 = vmatpush3.bf16.msra.mxu1 %v593_v9 }
  0x4a   :  { %531 = vmatprep.subr.bf16.mxu1 %v712_v0  ;;  %548 = vmatpush3.bf16.msra.mxu0 %v600_v16 }
  0x4b   :  { %549 = vmatprep.subr.bf16.mxu0 %v712_v0 }
  0x4d   :  { %532 = vmatpush3.bf16.msra.mxu1 %v594_v10 }
  0x4e   :  { %533 = vmatprep.subr.bf16.mxu1 %v712_v0  ;;  %550 = vmatpush3.bf16.msra.mxu0 %v601_v17 }
  0x4f   :  { %551 = vmatprep.subr.bf16.mxu0 %v712_v0 }
  0x51   :  { %534 = vmatpush3.bf16.msra.mxu1 %v595_v11 }
  0x52   :  { %535 = vmatprep.subr.bf16.mxu1 %v712_v0  ;;  %552 = vmatpush3.bf16.msra.mxu0 %v602_v18 }
  0x53   :  { %553 = vmatprep.subr.bf16.mxu0 %v712_v0 }
  0x55   :  { %536 = vmatpush3.bf16.msra.mxu1 %v596_v12 }
  0x56   :  { %561 = vmatprep.subr.bf16.mxu1 %v712_v0  ;;  %554 = vmatpush3.bf16.msra.mxu0 %v603_v31 }
  0x57   :  { %555 = vmatprep.subr.bf16.mxu0 %v712_v0 }
  0x5a   :  { %556 = vmatpush3.bf16.msra.mxu0 %v604_v32 }
 0x10f   :  { %v106_v24 = vpop.f32.mrb[0].mxu0 }
 0x110   :  { %v107_v25 = vadd.f32 %v106_v24, %v63_v23  ;;  %v519_v26 = vpop.f32.mrb[1].mxu0 }
 0x111   :  { %v109_v27 = vpop.f32.mrb[2].mxu0 }
 0x112   :  { %v112_v28 = vmax.f32 %v107_v25, 0.0  ;;  %v520_v29 = vpop.f32.mrb[3].mxu0 }
 0x114   :  { %v113_v30 = vpack.c.bf16 %v112_v28, %v112_v28 }
 0x116   :  { %538 = vmatmul.mubr.bf16.vlgmr.msra.gmra.mrb[0].mxu1 %v113_v30 }
 0x117   :  { %577 = vmatprep.mubr.msk.bf16.mxu1 %vm713_vm0, %v712_v0  ;;  %562 = vmatpush3.bf16.msra.mxu1 %v605_v33 }
 0x118   :  { %563 = vmatprep.subr.bf16.mxu1 %v712_v0 }
 0x11b   :  { %564 = vmatpush3.bf16.msra.mxu1 %v606_v34 }
 0x11c   :  { %565 = vmatprep.subr.bf16.mxu1 %v712_v0 }
 0x11f   :  { %566 = vmatpush3.bf16.msra.mxu1 %v607_v35 }
 0x120   :  { %567 = vmatprep.subr.bf16.mxu1 %v712_v0 }
 0x123   :  { %568 = vmatpush3.bf16.msra.mxu1 %v608_v36 }
 0x124   :  { %569 = vmatprep.subr.bf16.mxu1 %v712_v0 }
 0x127   :  { %570 = vmatpush3.bf16.msra.mxu1 %v609_v37 }
 0x128   :  { %571 = vmatprep.subr.bf16.mxu1 %v712_v0 }
 0x12b   :  { %572 = vmatpush3.bf16.msra.mxu1 %v610_v38 }
 0x12c   :  { %573 = vmatprep.subr.bf16.mxu1 %v712_v0 }
 0x12f   :  { %574 = vmatpush3.bf16.msra.mxu1 %v611_v48 }
 0x130   :  { %575 = vmatprep.subr.bf16.mxu1 %v712_v0 }
 0x133   :  { %576 = vmatpush3.bf16.msra.mxu1 %v612_v49 }
 0x1e9   :  { %v216_v41 = vpop.f32.mrb[0].mxu1 }
 0x1ea   :  { %v217_v42 = vadd.f32 %v216_v41, %v133_v40  ;;  %v539_v43 = vpop.f32.mrb[1].mxu1 }
 0x1eb   :  { %v219_v44 = vpop.f32.mrb[2].mxu1 }
 0x1ec   :  { %v222_v45 = vmax.f32 %v217_v42, 0.0  ;;  %v540_v46 = vpop.f32.mrb[3].mxu1 }
 0x1ee   :  { %v223_v47 = vpack.c.bf16 %v222_v45, %v222_v45 }
 0x1f0   :  { %558 = vmatmul.mubr.bf16.vlgmr.msra.gmra.mrb[4].mxu0 %v223_v47 }
 0x2c3   :  { %v327_v52 = vpop.f32.mrb[4].mxu0 }
 0x2c4   :  { %v328_v53 = vadd.f32 %v327_v52, %v244_v51  ;;  %v559_v54 = vpop.f32.mrb[5].mxu0 }
 0x2c5   :  { %v330_v55 = vpop.f32.mrb[6].mxu0 }
 0x2c6   :  { %v333_v56 = vmax.f32 %v328_v53, 0.0  ;;  %v560_v57 = vpop.f32.mrb[7].mxu0 }
 0x2c8   :  { %v334_v58 = vpack.c.bf16 %v333_v56, %v333_v56 }
 0x2ca   :  { %578 = vmatmul.mubr.bf16.vlgmr.msra.gmra.mrb[4].mxu1 %v334_v58 }
 0x39d   :  { %v438_v61 = vpop.f32.mrb[4].mxu1 }
 0x39e   :  { %v439_v62 = vadd.f32 %v438_v61, %v355_v60  ;;  %v579_v63 = vpop.f32.mrb[5].mxu1 }
 0x39f   :  { %v441_v0 = vpop.f32.mrb[6].mxu1 }
 0x3a0   :  { %444 = vst [vmem:[#allocation8] sm:$0xff] %v439_v62  ;;  %v580_v1 = vpop.f32.mrb[7].mxu1 }
 0x3a1   :  { %690 = shalt.err (!%p687_p0)
}
 0x3a2   :  { %s691_s30 = scalar_lea.hbm %s834_s4, 128 }
 0x3a3   :  { %p692_p1 = scmp.ne.s32.totalorder %s834_s4, %s691_s30  ;;  %p695_p2 = scmp.lt.u32.totalorder %s691_s30, %s834_s4 }
 0x3a5   :  { %p697_p3 = pnand %p695_p2, %p692_p1 }
 0x3a7   :  { %700 = shalt.err (!%p697_p3)
}
 0x3a8   :  { %454 = dma.vmem_to_hbm [thread:$0]  %s452_s26, 128, %s834_s4, [#allocation4]  }
 0x3a9   :  { %705 = dma.done.wait [#allocation4], 128  }
 0x3aa   :  { %706 = vsyncadd [#allocation4], 4294967168 }
 0x3ab   :  { %458 = vsyncpa [#allocation3], 1 }
 0x3ac   :  { %459 = vsyncpa [#allocation6], 1 }
 0x3ad   :  { %460 = vsyncpa [#allocation4], 1 }

</bundles_post_ra>
